<compile_context>
chip_gen: v7x
topology: tpu7x:2x2x1
jax: 0.10.0
libtpu: 0.0.40
codegen_flags: <defaults>
</compile_context>

<pallas_src>
import functools

import jax
import jax.numpy as jnp
from jax.experimental import pallas as pl
from jax.experimental.pallas import tpu as pltpu

Z_DIM = 32        # nn.Linear(z_dim, 256) input size (after concat)
HIDDEN = 256
IMG_DIM = 2       # posterior output dimension (2-D "circle" points)


def _round_up(x: int, m: int) -> int:
    return ((x + m - 1) // m) * m


def _posterior_kernel(x_ref, lab_ref, w1x_ref, w1l_ref, b1_ref, w2_ref, b2_ref,
                      o_ref):
    # First linear layer, with the torch.cat fused into two matmuls.
    h = jnp.dot(x_ref[...], w1x_ref[...],
                preferred_element_type=jnp.float32)              # (TB, HIDDEN)
    h = h + jnp.dot(lab_ref[...], w1l_ref[...],
                    preferred_element_type=jnp.float32)
    h = h + b1_ref[...]                                          # f32 bias add
    h = jnp.where(h > 0, h, 0.01 * h)                            # LeakyReLU(0.01), f32

    # Second linear layer; cast hidden back to the streaming dtype for the MXU.
    out = jnp.dot(h.astype(w2_ref.dtype), w2_ref[...],
                  preferred_element_type=jnp.float32) + b2_ref[...]
    o_ref[...] = out.astype(o_ref.dtype)


@functools.partial(jax.jit, static_argnames=("tile_b", "compute_dtype"))
def posterior_forward(x, label, w1, b1, w2, b2, *, tile_b=1024,
                      compute_dtype=jnp.bfloat16):
    """Fused Posterior forward.

    x:     (B, x_dim)   label: (B, label_dim),  x_dim + label_dim == z_dim
    w1:    (z_dim, HIDDEN)  b1: (HIDDEN,) or (1, HIDDEN)
    w2:    (HIDDEN, img_dim) b2: (img_dim,) or (1, img_dim)
    Returns (B, img_dim) float32.
    """
    B, x_dim = x.shape
    label_dim = label.shape[1]
    z_dim, hidden = w1.shape
    img_dim = w2.shape[1]
    assert x_dim + label_dim == z_dim

    # Split W1 once so the concat never materializes; cast weights/activations
    # to the streaming dtype (biases stay f32 for the VPU path — v5e-safe).
    w1x = w1[:x_dim].astype(compute_dtype)                       # (x_dim, HIDDEN)
    w1l = w1[x_dim:].astype(compute_dtype)                       # (label_dim, HIDDEN)
    w2c = w2.astype(compute_dtype)                               # (HIDDEN, img_dim)
    b1c = jnp.reshape(b1, (1, hidden)).astype(jnp.float32)
    b2c = jnp.reshape(b2, (1, img_dim)).astype(jnp.float32)

    xc = x.astype(compute_dtype)
    lc = label.astype(compute_dtype)

    # Batch tile: sublane-aligned (multiple of 8), pad B up to a multiple of it.
    tb = _round_up(min(tile_b, _round_up(B, 8)), 8)
    b_pad = _round_up(B, tb)
    if b_pad != B:
        xc = jnp.pad(xc, ((0, b_pad - B), (0, 0)))
        lc = jnp.pad(lc, ((0, b_pad - B), (0, 0)))

    grid = (pl.cdiv(b_pad, tb),)

    batch_spec = lambda feat: pl.BlockSpec((tb, feat), lambda i: (i, 0))
    const_spec = lambda r, c: pl.BlockSpec((r, c), lambda i: (0, 0))

    flops = 2 * b_pad * (x_dim * hidden + label_dim * hidden + hidden * img_dim)
    bytes_accessed = (
        xc.size * xc.dtype.itemsize + lc.size * lc.dtype.itemsize
        + w1x.size * w1x.dtype.itemsize + w1l.size * w1l.dtype.itemsize
        + w2c.size * w2c.dtype.itemsize
        + b1c.size * 4 + b2c.size * 4
        + b_pad * img_dim * 4)

    out = pl.pallas_call(
        _posterior_kernel,
        out_shape=jax.ShapeDtypeStruct((b_pad, img_dim), jnp.float32),
        grid=grid,
        in_specs=[
            batch_spec(x_dim),                 # x         — streamed per tile
            batch_spec(label_dim),             # label     — streamed per tile
            const_spec(x_dim, hidden),         # W1[:x_dim]   — VMEM resident
            const_spec(label_dim, hidden),     # W1[x_dim:]   — VMEM resident
            const_spec(1, hidden),             # b1           — VMEM resident
            const_spec(hidden, img_dim),       # W2           — VMEM resident
            const_spec(1, img_dim),            # b2           — VMEM resident
        ],
        out_specs=batch_spec(img_dim),
        compiler_params=pltpu.CompilerParams(
            dimension_semantics=("parallel",),
            vmem_limit_bytes=32 << 20,
        ),
        cost_estimate=pl.CostEstimate(
            flops=flops, transcendentals=0, bytes_accessed=bytes_accessed),
    )(xc, lc, w1x, w1l, b1c, w2c, b2c)

    return out[:B]


def _init_linear(key, fan_in, fan_out):
    # Deterministic init mimicking PyTorch's default: U(-1/sqrt(fan_in), +)
    kw, kb = jax.random.split(key)
    bound = 1.0 / (fan_in ** 0.5)
    w = jax.random.uniform(kw, (fan_in, fan_out), jnp.float32, -bound, bound)
    b = jax.random.uniform(kb, (1, fan_out), jnp.float32, -bound, bound)
    return w, b


def posterior_ref(x, label, w1, b1, w2, b2, compute_dtype=jnp.bfloat16):
    """Pure-JAX reference with the same bf16 streaming / f32 accumulation."""
    xl = jnp.concatenate([x.astype(compute_dtype).astype(jnp.float32),
                          label.astype(compute_dtype).astype(jnp.float32)],
                         axis=1)
    w1c = w1.astype(compute_dtype).astype(jnp.float32)
    w2c = w2.astype(compute_dtype).astype(jnp.float32)
    h = xl @ w1c + b1.reshape(1, -1)
    h = jnp.where(h > 0, h, 0.01 * h)
    h = h.astype(compute_dtype).astype(jnp.float32)
    return h @ w2c + b2.reshape(1, -1)


if __name__ == "__main__":
    key = jax.random.PRNGKey(0)
    k_x, k_lab, k_l1, k_l2 = jax.random.split(key, 4)

    LABEL_DIM = 8
    X_DIM = Z_DIM - LABEL_DIM                                  # 24

    w1, b1 = _init_linear(k_l1, Z_DIM, HIDDEN)
    w2, b2 = _init_linear(k_l2, HIDDEN, IMG_DIM)

    # Small case (B=2, single tile).
    B = 2
    x = jax.random.normal(k_x, (B, X_DIM), jnp.float32)
    label = jax.random.normal(k_lab, (B, LABEL_DIM), jnp.float32)

    out = posterior_forward(x, label, w1, b1, w2, b2)
    out = jax.block_until_ready(out)
    ref = posterior_ref(x, label, w1, b1, w2, b2)
    assert out.shape == (B, IMG_DIM)
    assert jnp.allclose(out, ref, atol=2e-3, rtol=2e-3), \
        float(jnp.max(jnp.abs(out - ref)))

    # Ragged batch exercising the multi-tile grid + padding path (tile_b=8).
    B2 = 23
    x2 = jax.random.normal(jax.random.PRNGKey(1), (B2, X_DIM), jnp.float32)
    l2 = jax.random.normal(jax.random.PRNGKey(2), (B2, LABEL_DIM), jnp.float32)
    out2 = jax.block_until_ready(
        posterior_forward(x2, l2, w1, b1, w2, b2, tile_b=8))
    ref2 = posterior_ref(x2, l2, w1, b1, w2, b2)
    assert out2.shape == (B2, IMG_DIM)
    assert jnp.allclose(out2, ref2, atol=2e-3, rtol=2e-3), \
        float(jnp.max(jnp.abs(out2 - ref2)))

    print("KERNEL_OK")
</pallas_src>

<mosaic_0001>
module attributes {stable_mosaic.version = 11 : i64} {
  func.func @_posterior_kernel(%arg0: i32, %arg1: memref<8x24xbf16, #tpu.memory_space<vmem>>, %arg2: memref<8x8xbf16, #tpu.memory_space<vmem>>, %arg3: memref<24x256xbf16, #tpu.memory_space<vmem>>, %arg4: memref<8x256xbf16, #tpu.memory_space<vmem>>, %arg5: memref<1x256xf32, #tpu.memory_space<vmem>>, %arg6: memref<256x2xbf16, #tpu.memory_space<vmem>>, %arg7: memref<1x2xf32, #tpu.memory_space<vmem>>, %arg8: memref<8x2xf32, #tpu.memory_space<vmem>>) attributes {dimension_semantics = [#tpu.dimension_semantics<parallel>], iteration_bounds = array<i64: 1>, scalar_prefetch = 0 : i64, scratch_operands = 0 : i64, tpu.core_type = #tpu.core_type<tc>, window_params = [{transform_indices = @transform_0, window_bounds = array<i64: 8, 24>}, {transform_indices = @transform_1, window_bounds = array<i64: 8, 8>}, {pipeline_mode = #tpu.pipeline_mode<synchronous>, transform_indices = @transform_2, window_bounds = array<i64: 24, 256>}, {pipeline_mode = #tpu.pipeline_mode<synchronous>, transform_indices = @transform_3, window_bounds = array<i64: 8, 256>}, {pipeline_mode = #tpu.pipeline_mode<synchronous>, transform_indices = @transform_4, window_bounds = array<i64: 1, 256>}, {pipeline_mode = #tpu.pipeline_mode<synchronous>, transform_indices = @transform_5, window_bounds = array<i64: 256, 2>}, {pipeline_mode = #tpu.pipeline_mode<synchronous>, transform_indices = @transform_6, window_bounds = array<i64: 1, 2>}, {transform_indices = @transform_7, window_bounds = array<i64: 8, 2>}]} {
    %c0 = arith.constant 0 : index
    %c0_0 = arith.constant 0 : index
    %0 = vector.load %arg1[%c0, %c0_0] : memref<8x24xbf16, #tpu.memory_space<vmem>>, vector<8x24xbf16>
    %c0_1 = arith.constant 0 : index
    %c0_2 = arith.constant 0 : index
    %1 = vector.load %arg3[%c0_1, %c0_2] : memref<24x256xbf16, #tpu.memory_space<vmem>>, vector<24x256xbf16>
    %cst = arith.constant dense<0.000000e+00> : vector<8x256xf32>
    %2 = tpu.matmul %0, %1, %cst {dimension_numbers = #tpu.dot_dimension_numbers<[1], [0], [0], [1], [0, 0, 1, 1], [], []>} : vector<8x24xbf16>, vector<24x256xbf16>, vector<8x256xf32> -> vector<8x256xf32>
    %c0_3 = arith.constant 0 : index
    %c0_4 = arith.constant 0 : index
    %3 = vector.load %arg2[%c0_3, %c0_4] : memref<8x8xbf16, #tpu.memory_space<vmem>>, vector<8x8xbf16>
    %c0_5 = arith.constant 0 : index
    %c0_6 = arith.constant 0 : index
    %4 = vector.load %arg4[%c0_5, %c0_6] : memref<8x256xbf16, #tpu.memory_space<vmem>>, vector<8x256xbf16>
    %cst_7 = arith.constant dense<0.000000e+00> : vector<8x256xf32>
    %5 = tpu.matmul %3, %4, %cst_7 {dimension_numbers = #tpu.dot_dimension_numbers<[1], [0], [0], [1], [0, 0, 1, 1], [], []>} : vector<8x8xbf16>, vector<8x256xbf16>, vector<8x256xf32> -> vector<8x256xf32>
    %6 = arith.addf %2, %5 : vector<8x256xf32>
    %c0_8 = arith.constant 0 : index
    %c0_9 = arith.constant 0 : index
    %7 = vector.load %arg5[%c0_8, %c0_9] : memref<1x256xf32, #tpu.memory_space<vmem>>, vector<1x256xf32>
    %8 = vector.broadcast %7 : vector<1x256xf32> to vector<8x256xf32>
    %9 = arith.addf %6, %8 : vector<8x256xf32>
    %cst_10 = arith.constant 0.000000e+00 : f32
    %10 = vector.broadcast %cst_10 : f32 to vector<8x256xf32>
    %11 = arith.cmpf ogt, %9, %10 : vector<8x256xf32>
    %cst_11 = arith.constant 0.00999999977 : f32
    %12 = vector.broadcast %cst_11 : f32 to vector<8x256xf32>
    %13 = arith.mulf %12, %9 : vector<8x256xf32>
    %14 = arith.select %11, %9, %13 : vector<8x256xi1>, vector<8x256xf32>
    %15 = arith.truncf %14 : vector<8x256xf32> to vector<8x256xbf16>
    %c0_12 = arith.constant 0 : index
    %c0_13 = arith.constant 0 : index
    %16 = vector.load %arg6[%c0_12, %c0_13] : memref<256x2xbf16, #tpu.memory_space<vmem>>, vector<256x2xbf16>
    %cst_14 = arith.constant dense<0.000000e+00> : vector<8x2xf32>
    %17 = tpu.matmul %15, %16, %cst_14 {dimension_numbers = #tpu.dot_dimension_numbers<[1], [0], [0], [1], [0, 0, 1, 1], [], []>} : vector<8x256xbf16>, vector<256x2xbf16>, vector<8x2xf32> -> vector<8x2xf32>
    %c0_15 = arith.constant 0 : index
    %c0_16 = arith.constant 0 : index
    %18 = vector.load %arg7[%c0_15, %c0_16] : memref<1x2xf32, #tpu.memory_space<vmem>>, vector<1x2xf32>
    %19 = vector.broadcast %18 : vector<1x2xf32> to vector<8x2xf32>
    %20 = arith.addf %17, %19 : vector<8x2xf32>
    %c0_17 = arith.constant 0 : index
    %c0_18 = arith.constant 0 : index
    %21 = vector.load %arg8[%c0_17, %c0_18] : memref<8x2xf32, #tpu.memory_space<vmem>>, vector<8x2xf32>
    tpu.vector_store %arg8[%c0_17, %c0_18], %20 {strides = array<i32>} : memref<8x2xf32, #tpu.memory_space<vmem>>, vector<8x2xf32>,
    return
  }
  func.func @transform_0(%arg0: i32) -> (i32, i32) {
    %c0_i32 = arith.constant 0 : i32
    %c0_i32_0 = arith.constant 0 : i32
    return %arg0, %c0_i32 : i32, i32
  }
  func.func @transform_1(%arg0: i32) -> (i32, i32) {
    %c0_i32 = arith.constant 0 : i32
    %c0_i32_0 = arith.constant 0 : i32
    return %arg0, %c0_i32 : i32, i32
  }
  func.func @transform_2(%arg0: i32) -> (i32, i32) {
    %c0_i32 = arith.constant 0 : i32
    %c0_i32_0 = arith.constant 0 : i32
    %c0_i32_1 = arith.constant 0 : i32
    return %c0_i32, %c0_i32_0 : i32, i32
  }
  func.func @transform_3(%arg0: i32) -> (i32, i32) {
    %c0_i32 = arith.constant 0 : i32
    %c0_i32_0 = arith.constant 0 : i32
    %c0_i32_1 = arith.constant 0 : i32
    return %c0_i32, %c0_i32_0 : i32, i32
  }
  func.func @transform_4(%arg0: i32) -> (i32, i32) {
    %c0_i32 = arith.constant 0 : i32
    %c0_i32_0 = arith.constant 0 : i32
    %c0_i32_1 = arith.constant 0 : i32
    return %c0_i32, %c0_i32_0 : i32, i32
  }
  func.func @transform_5(%arg0: i32) -> (i32, i32) {
    %c0_i32 = arith.constant 0 : i32
    %c0_i32_0 = arith.constant 0 : i32
    %c0_i32_1 = arith.constant 0 : i32
    return %c0_i32, %c0_i32_0 : i32, i32
  }
  func.func @transform_6(%arg0: i32) -> (i32, i32) {
    %c0_i32 = arith.constant 0 : i32
    %c0_i32_0 = arith.constant 0 : i32
    %c0_i32_1 = arith.constant 0 : i32
    return %c0_i32, %c0_i32_0 : i32, i32
  }
  func.func @transform_7(%arg0: i32) -> (i32, i32) {
    %c0_i32 = arith.constant 0 : i32
    %c0_i32_0 = arith.constant 0 : i32
    return %arg0, %c0_i32 : i32, i32
  }
}

</mosaic_0001>

<bundles_post_ra>
// kernel: posterior_forward.1
= control target key start
LH: loop header
LB: loop body
LE: loop exit
PB: predicated region body
PF: predicated region fallthrough
CT: control target
= control target key end

     0   :  { %vm42_vm0 = vcmask 1043456   ;;  %v432_v1 = vmov 0   ;;  %vm38_vm1 = vcmask 64512   ;;  %vm105_vm2 = vcmask 195584   ;;  %s552_s3 = inlined_call_operand.vmem [shape: bf16[8,256], index: 3, kind: input, shape index: {}]   ;;  %s553_s1 = inlined_call_operand.vmem [shape: bf16[8,8], index: 1, kind: input, shape index: {}]   ;;  %s554_s2 = inlined_call_operand.vmem [shape: bf16[24,256], index: 2, kind: input, shape index: {}]   ;;  %s555_s5 = inlined_call_operand.vmem [shape: bf16[256,2], index: 5, kind: input, shape index: {}]   ;;  %s556_s0 = inlined_call_operand.vmem [shape: bf16[8,24], index: 0, kind: input, shape index: {}]   ;;  %s557_s4 = inlined_call_operand.vmem [shape: f32[1,256], index: 4, kind: input, shape index: {}]   ;;  %s558_s6 = inlined_call_operand.vmem [shape: f32[1,2], index: 6, kind: input, shape index: {}]   ;;  %s559_s7 = inlined_call_operand.vmem [shape: f32[8,2], index: 7, kind: output, shape index: {}]  }
   0x1   :  { %v32_v0 = vld [vmem:[%s552_s3] sm:$0xff]  ;;  %81 = vmatprep.mubr.bf16.mxu1 %v432_v1  ;;  %v30_v7 = vld [vmem:[%s554_s2 + $0x10] sm:$0xff]  ;;  %v418_v13 = vld [vmem:[%s555_s5 + $0x48] sm:$0xff]   ;;  %v158_v29 = vlaneseq  ;;  %vm353_vm5 = vcmask 15360  }
   0x2   :  { %v360_v2 = vcombine.high %v32_v0, %v32_v0  ;;  %v359_v3 = vcombine.low %v32_v0, %v32_v0  ;;  %v413_v4 = vld [vmem:[%s554_s2 + $0x4] ss:$8 sps:$4 sm:$0xff]   ;;  %v31_v5 = vld [vmem:[%s553_s1] sm:$0xf]  ;;  %v365_v10 = vcombine.low %v30_v7, %v30_v7  ;;  %v366_v12 = vcombine.high %v30_v7, %v30_v7  ;;  %v420_v15 = vld [vmem:[%s555_s5 + $0x50] sm:$0xff]  }
   0x3   :  { %v411_v6 = vld [vmem:[%s554_s2] ss:$8 sps:$4 sm:$0xff]   ;;  %v421_v17 = vld [vmem:[%s555_s5 + $0x10] sm:$0xff]   ;;  %v422_v19 = vld [vmem:[%s555_s5 + $0x58] sm:$0xff]   ;;  %v159_v30 = vshrl.u32 %v158_v29, 7 }
   0x4   :  { %361 = vmatprep.subr.msk.bf16.mxu1 %vm42_vm0, %v360_v2  ;;  %v44_v8 = vsel %vm42_vm0, %v359_v3, 0  ;;  %v416_v9 = vld [vmem:[%s555_s5 + $0x40] sm:$0xff]   ;;  %v419_v14 = vld [vmem:[%s555_s5 + $0x8] sm:$0xff]   ;;  %v110_v16 = vsel %vm42_vm0, %v365_v10, 0  ;;  %v423_v20 = vld [vmem:[%s555_s5 + $0x18] sm:$0xff]  }
   0x5   :  { %50 = vmatpush1.bf16.msra.mxu1 %v44_v8  ;;  %v417_v11 = vld [vmem:[%s555_s5] sm:$0xff]   ;;  %386 = vmatprep.subr.bf16.mxu0 %v416_v9  ;;  %v426_v23 = vld [vmem:[%s555_s5 + $0x68] sm:$0xff]   ;;  %v428_v25 = vld [vmem:[%s555_s5 + $0x70] sm:$0xff]   ;;  %v160_v35 = vsub.s32 0, %v159_v30  ;;  %v164_v37 = vsub.s32 1, %v159_v30 }
   0x6   :  { %115 = vmatprep.subr.bf16.mxu1 %v413_v4  ;;  %387 = vmatpush3.bf16.msra.mxu0 %v417_v11  ;;  %v27_v18 = vld [vmem:[%s556_s0] sm:$0xf]  ;;  %v427_v24 = vld [vmem:[%s555_s5 + $0x28] sm:$0xff]   ;;  %v429_v26 = vld [vmem:[%s555_s5 + $0x30] sm:$0xff]  }
   0x7   :  { %388 = vmatprep.subr.bf16.mxu0 %v418_v13  ;;  %v424_v21 = vld [vmem:[%s555_s5 + $0x60] sm:$0xff]   ;;  %v430_v27 = vld [vmem:[%s555_s5 + $0x78] sm:$0xff]  }
   0x8   :  { %362 = vmatmul.mubr.msk.bf16.vlgmr.msra.gmra.mrb[0].mxu1 %vm38_vm1, %v31_v5  ;;  %v425_v22 = vld [vmem:[%s555_s5 + $0x20] sm:$0xff]   ;;  %v431_v28 = vld [vmem:[%s555_s5 + $0x38] sm:$0xff]  }
   0x9   :  { %116 = vmatpush1.bf16.msra.mxu1 %v411_v6  ;;  %147 = vmatprep.mubr.bf16.mxu1 %v432_v1  ;;  %v156_v36 = vld [vmem:[%s557_s4] sm:$0x3] }
   0xa   :  { %367 = vmatprep.subr.msk.bf16.mxu1 %vm42_vm0, %v366_v12  ;;  %389 = vmatpush3.bf16.msra.mxu0 %v419_v14  ;;  %v161_v38 = vrot.slane %v156_v36, %v160_v35  ;;  %v165_v40 = vrot.slane %v156_v36, %v164_v37  ;;  %v369_v55 = vld [vmem:[%s558_s6] ss:$0 sm:$0xff] }
   0xb   :  { %390 = vmatprep.subr.bf16.mxu0 %v420_v15 }
   0xd   :  { %118 = vmatpush1.bf16.msra.mxu1 %v110_v16 }
   0xe   :  { %391 = vmatpush3.bf16.msra.mxu0 %v421_v17 }
   0xf   :  { %392 = vmatprep.subr.bf16.mxu0 %v422_v19 }
  0x10   :  { %368 = vmatmul.mubr.msk.bf16.vlgmr.msra.gmra.mrb[4].mxu1 %vm105_vm2, %v27_v18 }
  0x12   :  { %393 = vmatpush3.bf16.msra.mxu0 %v423_v20 }
  0x13   :  { %394 = vmatprep.subr.bf16.mxu0 %v424_v21 }
  0x16   :  { %395 = vmatpush3.bf16.msra.mxu0 %v425_v22 }
  0x17   :  { %396 = vmatprep.subr.bf16.mxu0 %v426_v23 }
  0x1a   :  { %397 = vmatpush3.bf16.msra.mxu0 %v427_v24 }
  0x1b   :  { %398 = vmatprep.subr.bf16.mxu0 %v428_v25 }
  0x1e   :  { %399 = vmatpush3.bf16.msra.mxu0 %v429_v26 }
  0x1f   :  { %400 = vmatprep.subr.bf16.mxu0 %v430_v27 }
  0x22   :  { %401 = vmatpush3.bf16.msra.mxu0 %v431_v28 }
  0xdb   :  { %v83_v31 = vpop.f32.mrb[0].mxu1 }
  0xdc   :  { %v85_v32 = vpop.f32.mrb[1].mxu1 }
  0xdd   :  { %v87_v33 = vpop.f32.mrb[2].mxu1 }
  0xde   :  { %v88_v34 = vpop.f32.mrb[3].mxu1 }
  0xe3   :  { %v149_v39 = vpop.f32.mrb[4].mxu1 }
  0xe4   :  { %v150_v41 = vadd.f32 %v149_v39, %v83_v31  ;;  %v151_v42 = vpop.f32.mrb[5].mxu1 }
  0xe5   :  { %v152_v43 = vadd.f32 %v151_v42, %v85_v32  ;;  %v153_v44 = vpop.f32.mrb[6].mxu1 }
  0xe6   :  { %v168_v45 = vadd.f32 %v161_v38, %v150_v41  ;;  %v154_v46 = vpop.f32.mrb[7].mxu1 }
  0xe7   :  { %v169_v47 = vadd.f32 %v165_v40, %v152_v43 }
  0xe8   :  { %v172_v48 = vmul.f32 0.01, %v168_v45  ;;  %vm170_vm3 = vcmp.gt.f32.partialorder %v168_v45, 0.0 }
  0xe9   :  { %vm171_vm4 = vcmp.gt.f32.partialorder %v169_v47, 0.0  ;;  %v173_v49 = vmul.f32 0.01, %v169_v47 }
  0xea   :  { %v174_v50 = vsel %vm170_vm3, %v168_v45, %v172_v48 }
  0xeb   :  { %v175_v51 = vsel %vm171_vm4, %v169_v47, %v173_v49  ;;  %v176_v53 = vpack.c.bf16 %v174_v50, %v174_v50 }
  0xec   :  { %v177_v52 = vpack.c.bf16 %v175_v51, %v175_v51 }
  0xee   :  { %345 = vmatprep.mubr.bf16.mxu0 %v177_v52 }
  0xef   :  { %346 = vmatmul.mubr.bf16.vlgmr.msra.gmra.mrb[0].mxu0 %v176_v53 }
 0x1c2   :  { %v402_v54 = vpop.f32.mrb[0].mxu0 }
 0x1c3   :  { %v403_v56 = vpop.f32.mrb[1].mxu0 }
 0x1c4   :  { %v404_v57 = vadd.f32 %v403_v56, %v402_v54  ;;  %v405_v58 = vpop.f32.mrb[2].mxu0 }
 0x1c5   :  { %v406_v59 = vpop.f32.mrb[3].mxu0 }
 0x1c6   :  { %v348_v60 = vadd.f32 %v404_v57, %v369_v55 }
 0x1c8   :  { %354 = vst.msk [vmem:[%s559_s7] sm:$0xff] %vm353_vm5, %v348_v60 }

</bundles_post_ra>
